<compile_context>
chip_gen: v5e
topology: v5e:2x2
jax: 0.10.0
libtpu: 0.0.40
codegen_flags: <defaults>
</compile_context>

<pallas_src>
import jax
import jax.numpy as jnp
from jax import lax
from jax.experimental import pallas as pl
from jax.experimental.pallas import tpu as pltpu

_LANE = 128
_IGNORE_INDEX = -100  # torch.nn.CrossEntropyLoss default


def _round_up(x: int, m: int) -> int:
    return ((x + m - 1) // m) * m


def _choose_tile(hw: int, c: int, *, max_block_bytes: int = 1 << 20,
                 max_pixels: int = 8192) -> int:
    """Largest lane-multiple pixel tile with a logits block <= ~1 MiB."""
    budget = (max_block_bytes // (c * 4)) // _LANE * _LANE
    budget = max(_LANE, min(max_pixels, budget))
    hw_pad = _round_up(hw, _LANE)
    if hw_pad <= budget:
        return hw_pad
    # Prefer the largest tile <= budget that divides the lane-padded row so the
    # wrapper never has to pad/copy for nice shapes (e.g. 512*512).
    t = budget
    while t >= 1024:
        if hw_pad % t == 0:
            return t
        t -= _LANE
    return budget  # fall back: wrapper pads the row with ignore_index pixels


def _ce_kernel(x_ref, t_ref, loss_ref, cnt_ref):
    # x_ref:    (1, C, T) logits  (classes on sublanes, pixels on lanes)
    # t_ref:    (1, 1, T) int32 class indices
    # loss_ref: (1, 1, 128) f32 partial loss sums   (lane-dense output)
    # cnt_ref:  (1, 1, 128) f32 partial valid-pixel counts
    x = x_ref[...].astype(jnp.float32)
    t = t_ref[...]

    # numerically stable logsumexp over the class (sublane) axis
    m = jnp.max(x, axis=1, keepdims=True)                      # (1, 1, T)
    e = jnp.exp(x - m)
    lse = jnp.log(jnp.sum(e, axis=1, keepdims=True)) + m       # (1, 1, T)

    # gather x[pixel, target] without a gather: one-hot compare against an iota
    cls = lax.broadcasted_iota(jnp.int32, x.shape, 1)           # (1, C, T)
    picked = jnp.sum(jnp.where(cls == t, x, 0.0), axis=1, keepdims=True)

    valid = t != _IGNORE_INDEX                                  # (1, 1, T) bool
    loss = jnp.where(valid, lse - picked, 0.0)                  # (1, 1, T)
    cnt = valid.astype(jnp.float32)                             # (1, 1, T)

    # Fold the T lanes into 128-wide partial sums (cheap vreg-aligned slices);
    # the final cross-lane reduce + 1/P scale happen once in the wrapper.
    T = x.shape[-1]
    loss_acc = jnp.zeros((1, 1, _LANE), jnp.float32)
    cnt_acc = jnp.zeros((1, 1, _LANE), jnp.float32)
    for j in range(T // _LANE):
        lo = j * _LANE
        loss_acc = loss_acc + loss[:, :, lo:lo + _LANE]
        cnt_acc = cnt_acc + cnt[:, :, lo:lo + _LANE]
    loss_ref[...] = loss_acc
    cnt_ref[...] = cnt_acc


def segnet_loss(pred: jax.Array, target: jax.Array) -> jax.Array:
    """CrossEntropyLoss(pred, target); pred: (N,C,H,W) float, target: (N,H,W) int."""
    N, C, H, W = pred.shape
    HW = H * W

    # Free reshapes: keep NCHW contiguity, no transpose pass over HBM.
    x = pred.reshape(N, C, HW)
    t = target.astype(jnp.int32).reshape(N, 1, HW)

    tile = _choose_tile(HW, C)
    hw_pad = _round_up(HW, tile)
    if hw_pad != HW:
        # Pad the pixel row; padded targets use ignore_index so they drop out of
        # both the loss sum and the count (no in-kernel tail masking needed).
        x = jnp.pad(x, ((0, 0), (0, 0), (0, hw_pad - HW)))
        t = jnp.pad(t, ((0, 0), (0, 0), (0, hw_pad - HW)),
                    constant_values=_IGNORE_INDEX)

    num_p_tiles = hw_pad // tile
    grid = (N, num_p_tiles)
    G = N * num_p_tiles

    out_map = lambda n, p: (n * num_p_tiles + p, 0, 0)

    loss_parts, cnt_parts = pl.pallas_call(
        _ce_kernel,
        out_shape=(
            jax.ShapeDtypeStruct((G, 1, _LANE), jnp.float32),
            jax.ShapeDtypeStruct((G, 1, _LANE), jnp.float32),
        ),
        grid_spec=pltpu.PrefetchScalarGridSpec(
            num_scalar_prefetch=0,
            grid=grid,
            in_specs=[
                pl.BlockSpec((1, C, tile), lambda n, p: (n, 0, p)),
                pl.BlockSpec((1, 1, tile), lambda n, p: (n, 0, p)),
            ],
            out_specs=(
                pl.BlockSpec((1, 1, _LANE), out_map),
                pl.BlockSpec((1, 1, _LANE), out_map),
            ),
        ),
        compiler_params=pltpu.CompilerParams(
            dimension_semantics=("parallel", "parallel"),
            vmem_limit_bytes=32 * 1024 * 1024,
        ),
    )(x, t)

    # Tiny final reduction in the wrapper: mean over non-ignored pixels
    # (matches torch.nn.CrossEntropyLoss(reduction='mean', ignore_index=-100)).
    return jnp.sum(loss_parts) / jnp.sum(cnt_parts)


def _reference_loss(pred, target):
    # pure-JAX reference (matches torch.nn.CrossEntropyLoss, reduction='mean')
    N, C, H, W = pred.shape
    x = jnp.transpose(pred, (0, 2, 3, 1)).reshape(-1, C).astype(jnp.float32)
    t = target.reshape(-1)
    logp = x - jax.nn.logsumexp(x, axis=-1, keepdims=True)
    nll = -jnp.take_along_axis(logp, t[:, None], axis=-1)[:, 0]
    return jnp.mean(nll)


if __name__ == "__main__":
    key = jax.random.PRNGKey(0)
    k1, k2 = jax.random.split(key)

    N, C, H, W = 2, 4, 16, 16
    pred = jax.random.normal(k1, (N, C, H, W), dtype=jnp.float32)
    target = jax.random.randint(k2, (N, H, W), 0, C, dtype=jnp.int32)

    loss = segnet_loss(pred, target)
    loss = jax.block_until_ready(loss)

    ref = _reference_loss(pred, target)
    assert jnp.allclose(loss, ref, rtol=1e-5, atol=1e-5), (loss, ref)

    print("KERNEL_OK")
</pallas_src>

<mosaic_0001>
module attributes {stable_mosaic.version = 11 : i64} {
  func.func @_ce_kernel(%arg0: i32, %arg1: i32, %arg2: memref<1x4x256xf32, #tpu.memory_space<vmem>>, %arg3: memref<1x1x256xi32, #tpu.memory_space<vmem>>, %arg4: memref<1x1x128xf32, #tpu.memory_space<vmem>>, %arg5: memref<1x1x128xf32, #tpu.memory_space<vmem>>) attributes {dimension_semantics = [#tpu.dimension_semantics<parallel>, #tpu.dimension_semantics<parallel>], iteration_bounds = array<i64: 2, 1>, scalar_prefetch = 0 : i64, scratch_operands = 0 : i64, tpu.core_type = #tpu.core_type<tc>, window_params = [{transform_indices = @transform_0, window_bounds = array<i64: 1, 4, 256>}, {transform_indices = @transform_1, window_bounds = array<i64: 1, 1, 256>}, {transform_indices = @transform_2, window_bounds = array<i64: 1, 1, 128>}, {transform_indices = @transform_3, window_bounds = array<i64: 1, 1, 128>}]} {
    %c0 = arith.constant 0 : index
    %c0_0 = arith.constant 0 : index
    %c0_1 = arith.constant 0 : index
    %0 = vector.load %arg2[%c0, %c0_0, %c0_1] : memref<1x4x256xf32, #tpu.memory_space<vmem>>, vector<1x4x256xf32>
    %c0_2 = arith.constant 0 : index
    %c0_3 = arith.constant 0 : index
    %c0_4 = arith.constant 0 : index
    %1 = vector.load %arg3[%c0_2, %c0_3, %c0_4] : memref<1x1x256xi32, #tpu.memory_space<vmem>>, vector<1x1x256xi32>
    %cst = arith.constant dense<0xFF800000> : vector<1x256xf32>
    %2 = vector.multi_reduction <maximumf>, %0, %cst [1] : vector<1x4x256xf32> to vector<1x256xf32>
    %3 = vector.shape_cast %2 : vector<1x256xf32> to vector<1x1x256xf32>
    %4 = vector.broadcast %3 : vector<1x1x256xf32> to vector<1x4x256xf32>
    %5 = arith.subf %0, %4 : vector<1x4x256xf32>
    %6 = math.exp %5 : vector<1x4x256xf32>
    %cst_5 = arith.constant dense<0.000000e+00> : vector<1x256xf32>
    %7 = vector.multi_reduction <add>, %6, %cst_5 [1] : vector<1x4x256xf32> to vector<1x256xf32>
    %8 = vector.shape_cast %7 : vector<1x256xf32> to vector<1x1x256xf32>
    %9 = math.log %8 : vector<1x1x256xf32>
    %10 = arith.addf %9, %3 : vector<1x1x256xf32>
    %11 = tpu.iota {dimensions = array<i32: 1>} : vector<1x4x256xi32>
    %12 = vector.broadcast %1 : vector<1x1x256xi32> to vector<1x4x256xi32>
    %13 = arith.cmpi eq, %11, %12 : vector<1x4x256xi32>
    %cst_6 = arith.constant 0.000000e+00 : f32
    %14 = vector.broadcast %cst_6 : f32 to vector<1x4x256xf32>
    %15 = arith.select %13, %0, %14 : vector<1x4x256xi1>, vector<1x4x256xf32>
    %cst_7 = arith.constant dense<0.000000e+00> : vector<1x256xf32>
    %16 = vector.multi_reduction <add>, %15, %cst_7 [1] : vector<1x4x256xf32> to vector<1x256xf32>
    %17 = vector.shape_cast %16 : vector<1x256xf32> to vector<1x1x256xf32>
    %c-100_i32 = arith.constant -100 : i32
    %18 = vector.broadcast %c-100_i32 : i32 to vector<1x1x256xi32>
    %19 = arith.cmpi ne, %1, %18 : vector<1x1x256xi32>
    %20 = arith.subf %10, %17 : vector<1x1x256xf32>
    %cst_8 = arith.constant 0.000000e+00 : f32
    %21 = vector.broadcast %cst_8 : f32 to vector<1x1x256xf32>
    %22 = arith.select %19, %20, %21 : vector<1x1x256xi1>, vector<1x1x256xf32>
    %23 = arith.extui %19 : vector<1x1x256xi1> to vector<1x1x256xi32>
    %24 = arith.sitofp %23 : vector<1x1x256xi32> to vector<1x1x256xf32>
    %cst_9 = arith.constant 0.000000e+00 : f32
    %25 = vector.broadcast %cst_9 : f32 to vector<1x1x128xf32>
    %cst_10 = arith.constant 0.000000e+00 : f32
    %26 = vector.broadcast %cst_10 : f32 to vector<1x1x128xf32>
    %27 = vector.extract_strided_slice %22 {offsets = [0, 0, 0], sizes = [1, 1, 128], strides = [1, 1, 1]} : vector<1x1x256xf32> to vector<1x1x128xf32>
    %28 = arith.addf %25, %27 : vector<1x1x128xf32>
    %29 = vector.extract_strided_slice %24 {offsets = [0, 0, 0], sizes = [1, 1, 128], strides = [1, 1, 1]} : vector<1x1x256xf32> to vector<1x1x128xf32>
    %30 = arith.addf %26, %29 : vector<1x1x128xf32>
    %31 = vector.extract_strided_slice %22 {offsets = [0, 0, 128], sizes = [1, 1, 128], strides = [1, 1, 1]} : vector<1x1x256xf32> to vector<1x1x128xf32>
    %32 = arith.addf %28, %31 : vector<1x1x128xf32>
    %33 = vector.extract_strided_slice %24 {offsets = [0, 0, 128], sizes = [1, 1, 128], strides = [1, 1, 1]} : vector<1x1x256xf32> to vector<1x1x128xf32>
    %34 = arith.addf %30, %33 : vector<1x1x128xf32>
    %c0_11 = arith.constant 0 : index
    %c0_12 = arith.constant 0 : index
    %c0_13 = arith.constant 0 : index
    %35 = vector.load %arg4[%c0_11, %c0_12, %c0_13] : memref<1x1x128xf32, #tpu.memory_space<vmem>>, vector<1x1x128xf32>
    tpu.vector_store %arg4[%c0_11, %c0_12, %c0_13], %32 {strides = array<i32>} : memref<1x1x128xf32, #tpu.memory_space<vmem>>, vector<1x1x128xf32>,
    %c0_14 = arith.constant 0 : index
    %c0_15 = arith.constant 0 : index
    %c0_16 = arith.constant 0 : index
    %36 = vector.load %arg5[%c0_14, %c0_15, %c0_16] : memref<1x1x128xf32, #tpu.memory_space<vmem>>, vector<1x1x128xf32>
    tpu.vector_store %arg5[%c0_14, %c0_15, %c0_16], %34 {strides = array<i32>} : memref<1x1x128xf32, #tpu.memory_space<vmem>>, vector<1x1x128xf32>,
    return
  }
  func.func @transform_0(%arg0: i32, %arg1: i32) -> (i32, i32, i32) {
    %c0_i32 = arith.constant 0 : i32
    %c0_i32_0 = arith.constant 0 : i32
    return %arg0, %c0_i32, %arg1 : i32, i32, i32
  }
  func.func @transform_1(%arg0: i32, %arg1: i32) -> (i32, i32, i32) {
    %c0_i32 = arith.constant 0 : i32
    %c0_i32_0 = arith.constant 0 : i32
    return %arg0, %c0_i32, %arg1 : i32, i32, i32
  }
  func.func @transform_2(%arg0: i32, %arg1: i32) -> (i32, i32, i32) {
    %c1_i32 = arith.constant 1 : i32
    %0 = arith.muli %arg0, %c1_i32 : i32
    %1 = arith.addi %0, %arg1 : i32
    %c0_i32 = arith.constant 0 : i32
    %c0_i32_0 = arith.constant 0 : i32
    %c0_i32_1 = arith.constant 0 : i32
    return %1, %c0_i32, %c0_i32_0 : i32, i32, i32
  }
  func.func @transform_3(%arg0: i32, %arg1: i32) -> (i32, i32, i32) {
    %c1_i32 = arith.constant 1 : i32
    %0 = arith.muli %arg0, %c1_i32 : i32
    %1 = arith.addi %0, %arg1 : i32
    %c0_i32 = arith.constant 0 : i32
    %c0_i32_0 = arith.constant 0 : i32
    %c0_i32_1 = arith.constant 0 : i32
    return %1, %c0_i32, %c0_i32_0 : i32, i32, i32
  }
}

</mosaic_0001>

<bundles_post_ra>
// kernel: tpu_custom_call.1
= control target key start
LH: loop header
LB: loop body
LE: loop exit
PB: predicated region body
PF: predicated region fallthrough
CT: control target
= control target key end

     0   :  { %9 = vsyncpa [#allocation3], 0  ;;  %s1030_s0 = inlined_call_operand.hbm [shape: f32[2,4,256], index: 0, kind: input, shape index: {}]   ;;  %s1031_s1 = inlined_call_operand.hbm [shape: s32[2,1,256], index: 1, kind: input, shape index: {}]   ;;  %s1032_s2 = inlined_call_operand.hbm [shape: f32[2,1,128], index: 2, kind: output, shape index: {0}]   ;;  %s1033_s3 = inlined_call_operand.hbm [shape: f32[2,1,128], index: 3, kind: output, shape index: {1}]  }
   0x1   :  { %11 = vsyncpa [#allocation3 + $0x1], 0 }
   0x2   :  { %12 = vsyncpa [#allocation6], 0 }
   0x3   :  { %14 = vsyncpa [#allocation6 + $0x1], 0 }
   0x4   :  { %15 = vsyncpa [#allocation4], 0 }
   0x5   :  { %17 = vsyncpa [#allocation4 + $0x1], 0 }
   0x6   :  { %18 = vsyncpa [#allocation9], 0 }
   0x7   :  { %20 = vsyncpa [#allocation9 + $0x1], 0  ;;  %s833_s12 = smov 0   ;;  %s835_s13 = smov 0  }
   0x8   :  { %s837_s14 = smov 0   ;;  %s839_s15 = smov 0  }
   0x9   :  { %s841_s16 = smov 0   ;;  %s843_s17 = smov 0  }
   0xa LB: > { %s537_s18 = sadd.s32 4294967295, %s810_s17   ;;  %s538_s19 = sadd.s32 4294967294, %s810_s17   ;;  %s810_s17 = sphi %s843_s17, %s26_s17   ;;  %s806_s16 = sphi %s841_s16, %s1047_s16   ;;  %s802_s15 = sphi %s839_s15, %s1046_s15   ;;  %s798_s14 = sphi %s837_s14, %s1045_s14   ;;  %s794_s13 = sphi %s835_s13, %s1044_s13   ;;  %s790_s12 = sphi %s833_s12, %s1043_s12  }
   0xb   : > { %s38_s20 = sadd.s32 1, %s806_s16  ;;  %s47_s21 = sadd.s32 1, %s798_s14 }
   0xc   : > { %p40_p0 = scmp.ge.s32.totalorder %s38_s20, 2  ;;  %p54_p1 = scmp.ne.s32.totalorder %s798_s14, %s794_s13 }
   0xd   : > { %p55_p2 = scmp.eq.s32.totalorder %s810_s17, 0  ;;  %p60_p3 = scmp.ne.s32.totalorder %s794_s13, %s790_s12 }
   0xe   : > { %s1049_s20 = smov (%p40_p0, %s38_s20), 0  ;;  %p61_p5 = scmp.eq.s32.totalorder %s537_s18, 0 }
   0xf   : > { %p874_p4 = por %p55_p2, %p54_p1  ;;  %s42_s23 = ssub.s32 %s806_s16, %s1049_s20 }
  0x10   : > { %p114_p6 = scmp.eq.s32.totalorder %s537_s18, 1  ;;  %p45_p7 = scmp.eq.s32.totalorder %s42_s23, 0 }
  0x11   : > { %p880_p8 = por %p61_p5, %p60_p3  ;;  %p120_p10 = scmp.eq.s32.totalorder %s538_s19, 1 }
  0x12   : > { %p884_p9 = por %p114_p6, %p54_p1  ;;  %p540_p12 = scmp.ge.s32.totalorder %s810_s17, 2 }
  0x13   : > { %s889_s26 = scalar_select %p45_p7, %s798_s14, %s47_s21  }
  0x14   : > { %p891_p11 = por %p120_p10, %p60_p3  ;;  %p575_p13 = scmp.lt.s32.totalorder %s810_s17, 2 }
  0x15   : > { %s168_s28 = sand.u32 1, %s798_s14   ;;  %s552_s30 = sshll.u32 %s806_s16, 3 }
  0x16   : > { %s541_s29 = sshll.u32 %s168_s28, 3  ;;  %s179_s6 = scalar_lea.hbm %s1030_s0, %s552_s30 }
  0x17   : > { %s172_s7 = scalar_lea.vmem [#allocation2], %s541_s29  ;;  %s181_s9 = sshll.u32 %s179_s6, 4  ;;  %s182_s9 = int_to_ptr.hbm [resolvable:$true] %s181_s9 }
  0x18   : > { %s183_s8 = sshll.u32 %s172_s7, 4  ;;  %p904_p0 = pnand %p575_p13, %p874_p4  ;;  %s184_s8 = int_to_ptr.vmem [resolvable:$true] %s183_s8 }
  0x19   : > { %p546_p1 = scmp.ge.s32.totalorder %s810_s17, 1  ;;  %p209_p2 = scmp.lt.s32.totalorder %s810_s17, 3 }
  0x1a   : > { %s169_s11 = scalar_lea.sflag [#allocation3], %s168_s28  ;;  %s544_s18 = sshll.u32 %s168_s28, 1 }
  0x1b   : > { %564 = dma.hbm_to_vmem [thread:$0]  (!%p904_p0), %s182_s9, 128, %s184_s8, %s169_s11  }
  0x1c   : > { %p210_p3 = pnand %p546_p1, %p209_p2  ;;  %s545_s19 = sshll.u32 %s806_s16, 1 }
  0x1d   : > { %s200_s29 = scalar_lea.hbm %s1031_s1, %s545_s19  ;;  %s194_s30 = scalar_lea.vmem [#allocation5], %s544_s18 }
  0x1e   : > { %s204_s22 = sshll.u32 %s194_s30, 4  ;;  %s202_s4 = sshll.u32 %s200_s29, 4  ;;  %s205_s22 = int_to_ptr.vmem [resolvable:$true] %s204_s22  ;;  %s203_s4 = int_to_ptr.hbm [resolvable:$true] %s202_s4 }
  0x1f   : > { %s191_s5 = scalar_lea.sflag [#allocation6], %s168_s28  ;;  %213 = sbr.rel (%p210_p3) target bundleno = 122 (0x7a), region = 28 }
  0x20   : > { %567 = dma.hbm_to_vmem [thread:$0]  (!%p904_p0), %s203_s4, 32, %s205_s22, %s191_s5  }
  0x21   : > { %s919_s6 = sand.u32 (!%p210_p3), 1, %s794_s13  }
  0x22   : > { %s547_s7 = sshll.u32 (!%p210_p3), %s919_s6, 3  ;;  %s216_s8 = scalar_lea.sflag (!%p210_p3), [#allocation3], %s919_s6 }
  0x23   : > { %s219_s9 = scalar_lea.vmem (!%p210_p3), [#allocation2], %s547_s7 }
  0x24   : > { %773 = dma.done.wait (%p880_p8), %s216_s8, 128  }
  0x25   : > { %775 = vsyncadd (%p880_p8), %s216_s8, 4294967168  ;;  %s548_s28 = sshll.u32 %s919_s6, 1  ;;  %s226_s10 = scalar_lea.sflag [#allocation6], %s919_s6 }
  0x26   : > { %s229_s11 = scalar_lea.vmem [#allocation5], %s548_s28 }
  0x27   : > { %777 = dma.done.wait (%p880_p8), %s226_s10, 32  }
  0x28   : > { %779 = vsyncadd (%p880_p8), %s226_s10, 4294967264  ;;  %v265_v0 = vld [vmem:[%s219_s9] sm:$0xff]  ;;  %vm273_vm0 = vcmask 1043456   ;;  %v942_v22 = vld [vmem:[%s229_s11] sm:$0x3]  ;;  %s401_s19 = scalar_lea.hbm %s1033_s3, %s802_s15  ;;  %v322_v23 = vlaneseq  ;;  %v812_v24 = vmov 0.0  }
  0x29   : > { %268 = vst [vmem:[#allocation1] ss:$2 sm:$0xff] %v265_v0  ;;  %vm349_vm1 = vcmp.ne.s32.totalorder %v942_v22, 4294967196  ;;  %s260_s21 = scalar_lea.vmem [#allocation8], %s919_s6  ;;  %s954_s29 = sshll.u32 %s401_s19, 4  ;;  %v324_v34 = vperm.slane %v942_v22, 0  ;;  %s406_s29 = int_to_ptr.hbm [resolvable:$true] %s954_s29 }
  0x2a   : > { %v549_v25 = vsel %vm349_vm1, 1.0, %v812_v24  ;;  %s952_s23 = sshll.u32 %s260_s21, 4  ;;  %v323_v30 = vshrl.u32 %v322_v23, 7  ;;  %v325_v35 = vperm.slane %v942_v22, 1  ;;  %s378_s30 = scalar_lea.sflag [#allocation9], %s919_s6  ;;  %s404_s23 = int_to_ptr.vmem [resolvable:$true] %s952_s23 }
  0x2b   : > { %v368_v31 = vrot.slane %v549_v25, 1  ;;  %s706_s22 = sshra.s32 %s406_s29, 4  ;;  %s712_s8 = scalar_lea.hbm %s1033_s3, 2  ;;  %s707_s22 = int_to_ptr.hbm [resolvable:$true] %s706_s22 }
  0x2c   : > { %vm962_vm2 = vcmp.eq.s32.totalorder %v323_v30, %v324_v34  ;;  %vm966_vm3 = vcmp.eq.s32.totalorder %v323_v30, %v325_v35  ;;  %s708_s4 = scalar_lea.hbm %s707_s22, 1  ;;  %p713_p7 = scmp.lt.s32.totalorder %s707_s22, %s1033_s3 }
  0x2d   : > { %v370_v36 = vadd.f32 %v549_v25, %v368_v31  ;;  %p709_p4 = scmp.ne.s32.totalorder %s707_s22, %s708_s4  ;;  %p714_p8 = scmp.lt.s32.totalorder %s712_s8, %s708_s4 }
  0x2f   : > { %372 = vst [vmem:[%s260_s21] sm:$0x1] %v370_v36  ;;  %p710_p5 = pnand %p709_p4, %p884_p9  ;;  %p715_p10 = por %p714_p8, %p713_p7 }
  0x30   : > { %v269_v1 = vld.sshfl [vmem:[#allocation1] sm:$0xff pattern:$0x75316420]  ;;  %v270_v2 = vld.sshfl [vmem:[#allocation1 + $0x8] sm:$0xff pattern:$0x75316420] }
  0x31   : > { %v274_v3 = vsel %vm273_vm0, %v269_v1, -inf  ;;  %v281_v4 = vsel %vm273_vm0, %v270_v2, -inf  ;;  %p711_p6 = pneg %p710_p5 }
  0x32   : > { %v275_v5 = vrot.slane %v274_v3, 4  ;;  %v282_v6 = vrot.slane %v281_v4, 4 }
  0x33   : > { %p716_p13 = pnand %p715_p10, %p711_p6 }
  0x34   : > { %v276_v7 = vmax.f32 %v274_v3, %v275_v5  ;;  %v283_v8 = vmax.f32 %v281_v4, %v282_v6 }
  0x36   : > { %v277_v9 = vrot.slane %v276_v7, 2  ;;  %v284_v10 = vrot.slane %v283_v8, 2 }
  0x38   : > { %v278_v11 = vmax.f32 %v276_v7, %v277_v9  ;;  %v285_v12 = vmax.f32 %v283_v8, %v284_v10 }
  0x3a   : > { %v279_v13 = vrot.slane %v278_v11, 1  ;;  %v286_v14 = vrot.slane %v285_v12, 1 }
  0x3c   : > { %v935_v15 = vmax.f32 %v285_v12, %v286_v14  ;;  %v937_v16 = vmax.f32 %v278_v11, %v279_v13 }
  0x3e   : > { %v290_v17 = vrot.slane %v935_v15, 4 }
  0x40   : > { %v291_v18 = vsel %vm273_vm0, %v937_v16, %v290_v17 }
  0x41   : > { %v293_v19 = vsub.f32 %v265_v0, %v291_v18 }
  0x43   : > { %v294_v20 = vmul.f32 1.442695, %v293_v19 }
  0x45   : > { %626 = vpow2.f32 %v294_v20 }
  0x4b   : > { %v627_v21 = vpop.eup %626 }
  0x4c   : > { %297 = vst [vmem:[#allocation1] ss:$2 sm:$0xff] %v627_v21 }
  0x53   : > { %v298_v26 = vld.sshfl [vmem:[#allocation1] sm:$0xff pattern:$0x75316420]  ;;  %v299_v27 = vld.sshfl [vmem:[#allocation1 + $0x8] sm:$0xff pattern:$0x75316420] }
  0x54   : > { %v302_v28 = vsel %vm273_vm0, %v298_v26, 0.0  ;;  %v309_v29 = vsel %vm273_vm0, %v299_v27, 0.0  ;;  %328 = vst [vmem:[#allocation1] ss:$2 sm:$0xff] %v265_v0 }
  0x55   : > { %v303_v32 = vrot.slane %v302_v28, 4  ;;  %v310_v33 = vrot.slane %v309_v29, 4 }
  0x57   : > { %v304_v37 = vadd.f32 %v303_v32, %v302_v28  ;;  %v311_v38 = vadd.f32 %v310_v33, %v309_v29 }
  0x59   : > { %v305_v39 = vrot.slane %v304_v37, 2  ;;  %v312_v40 = vrot.slane %v311_v38, 2 }
  0x5a   : > { %719 = shalt.err (!%p716_p13)
}
  0x5b   : > { %558 = dma.vmem_to_hbm [thread:$0]  (%p884_p9), %s404_s23, 16, %s406_s29, %s378_s30   ;;  %v306_v43 = vadd.f32 %v305_v39, %v304_v37  ;;  %v313_v44 = vadd.f32 %v312_v40, %v311_v38  ;;  %v329_v45 = vld.sshfl [vmem:[#allocation1] sm:$0xff pattern:$0x75316420]  ;;  %vm355_vm4 = vcmask 1040384  }
  0x5c   : > { %v330_v46 = vld.sshfl [vmem:[#allocation1 + $0x8] sm:$0xff pattern:$0x75316420]  ;;  %v333_v47 = vsel %vm962_vm2, %v329_v45, 0.0  ;;  %s387_s24 = scalar_lea.hbm %s1032_s2, %s802_s15  ;;  %s254_s18 = scalar_lea.vmem [#allocation7], %s919_s6 }
  0x5d   : > { %v334_v48 = vsel %vm966_vm3, %v330_v46, 0.0  ;;  %v307_v49 = vrot.slane %v306_v43, 1  ;;  %v314_v50 = vrot.slane %v313_v44, 1  ;;  %v335_v51 = vsel %vm273_vm0, %v333_v47, 0.0  ;;  %s389_s19 = sshll.u32 %s254_s18, 4  ;;  %s391_s21 = sshll.u32 %s387_s24, 4  ;;  %s390_s19 = int_to_ptr.vmem [resolvable:$true] %s389_s19  ;;  %s392_s21 = int_to_ptr.hbm [resolvable:$true] %s391_s21 }
  0x5e   : > { %v342_v52 = vsel %vm273_vm0, %v334_v48, 0.0  ;;  %v336_v53 = vrot.slane %v335_v51, 4  ;;  %s374_s23 = scalar_lea.sflag [#allocation4], %s919_s6  ;;  %s734_s29 = sshra.s32 %s392_s21, 4  ;;  %s735_s29 = int_to_ptr.hbm [resolvable:$true] %s734_s29 }
  0x5f   : > { %v343_v54 = vrot.slane %v342_v52, 4  ;;  %v308_v55 = vadd.f32 %v307_v49, %v306_v43  ;;  %v315_v56 = vadd.f32 %v314_v50, %v313_v44  ;;  %s736_s30 = scalar_lea.hbm %s735_s29, 1  ;;  %s740_s4 = scalar_lea.hbm %s1032_s2, 2 }
  0x60   : > { %v337_v57 = vadd.f32 %v336_v53, %v335_v51  ;;  %p737_p0 = scmp.ne.s32.totalorder %s735_s29, %s736_s30  ;;  %p741_p3 = scmp.lt.s32.totalorder %s735_s29, %s1032_s2 }
  0x61   : > { %v344_v58 = vadd.f32 %v343_v54, %v342_v52  ;;  %628 = vlog2.f32 %v308_v55  ;;  %p742_p4 = scmp.lt.s32.totalorder %s740_s4, %s736_s30 }
  0x62   : > { %630 = vlog2.f32 %v315_v56  ;;  %v338_v59 = vrot.slane %v337_v57, 2  ;;  %p738_p1 = pnand %p737_p0, %p884_p9 }
  0x63   : > { %v345_v60 = vrot.slane %v344_v58, 2  ;;  %p743_p5 = por %p742_p4, %p741_p3 }
  0x64   : > { %v339_v62 = vadd.f32 %v338_v59, %v337_v57  ;;  %p739_p2 = pneg %p738_p1 }
  0x65   : > { %v346_v61 = vadd.f32 %v345_v60, %v344_v58 }
  0x66   : > { %v340_v4 = vrot.slane %v339_v62, 1  ;;  %p744_p6 = pnand %p743_p5, %p739_p2 }
  0x67   : > { %v629_v63 = vpop.eup %628  ;;  %v347_v0 = vrot.slane %v346_v61, 1 }
  0x68   : > { %v631_v1 = vpop.eup %630  ;;  %v317_v2 = vmul.f32 0.6931472, %v629_v63  ;;  %v341_v8 = vadd.f32 %v340_v4, %v339_v62 }
  0x69   : > { %v319_v3 = vmul.f32 0.6931472, %v631_v1  ;;  %v348_v7 = vadd.f32 %v347_v0, %v346_v61 }
  0x6a   : > { %v320_v5 = vadd.f32 %v317_v2, %v937_v16 }
  0x6b   : > { %v321_v6 = vadd.f32 %v319_v3, %v935_v15 }
  0x6c   : > { %v350_v10 = vsub.f32 %v320_v5, %v341_v8 }
  0x6d   : > { %v351_v9 = vsub.f32 %v321_v6, %v348_v7 }
  0x6f   : > { %v354_v11 = vrot.slane %v351_v9, 7 }
  0x71   : > { %v356_v12 = vsel %vm355_vm4, %v350_v10, %v354_v11 }
  0x72   : > { %v358_v13 = vsel %vm349_vm1, %v356_v12, 0.0 }
  0x73   : > { %v364_v14 = vrot.slane %v358_v13, 1 }
  0x75   : > { %v366_v15 = vadd.f32 %v364_v14, %v358_v13 }
  0x77   : > { %371 = vst [vmem:[%s254_s18] sm:$0x1] %v366_v15 }
  0x78   : > { %747 = shalt.err (!%p744_p6)
}
  0x79   : > { %557 = dma.vmem_to_hbm [thread:$0]  (%p884_p9), %s390_s19, 16, %s392_s21, %s374_s23  }
  0x7a PF: > { %s417_s6 = sand.u32 1, %s790_s12   ;;  %p569_p7 = pnand %p540_p12, %p891_p11 }
  0x7b   : > { %s418_s8 = scalar_lea.sflag [#allocation4], %s417_s6 }
  0x7c   : > { %p570_p8 = pneg %p569_p7 }
  0x7e   : > { %781 = dma.done.wait (%p570_p8), %s418_s8, 16  }
  0x7f   : > { %783 = vsyncadd (%p570_p8), %s418_s8, 4294967280  ;;  %s427_s9 = scalar_lea.sflag [#allocation9], %s417_s6 }
  0x80   : > { %785 = dma.done.wait (%p570_p8), %s427_s9, 16  }
  0x81   : > { %787 = vsyncadd (%p570_p8), %s427_s9, 4294967280  ;;  %s26_s17 = sadd.s32 1, %s810_s17   ;;  %s1043_s12 = smov %s794_s13 }
  0x82   : > { %p23_p10 = scmp.ge.s32.totalorder %s26_s17, 4   ;;  %s1044_s13 = smov %s798_s14 }
  0x83   : > { %s1045_s14 = smov %s889_s26  ;;  %s1046_s15 = smov %s806_s16 }
  0x84   : > { %s1047_s16 = smov %s1049_s20  ;;  %25 = sbr.rel (!%p23_p10) target bundleno = 10 (0xa), region = 103 }
  0x89   :  { %432 = vsyncpa [#allocation3], 1 }
  0x8a   :  { %434 = vsyncpa [#allocation3 + $0x1], 1 }
  0x8b   :  { %435 = vsyncpa [#allocation6], 1 }
  0x8c   :  { %437 = vsyncpa [#allocation6 + $0x1], 1 }
  0x8d   :  { %438 = vsyncpa [#allocation4], 1 }
  0x8e   :  { %440 = vsyncpa [#allocation4 + $0x1], 1 }
  0x8f   :  { %441 = vsyncpa [#allocation9], 1 }
  0x90   :  { %443 = vsyncpa [#allocation9 + $0x1], 1 }

</bundles_post_ra>
